<compile_context>
chip_gen: v6e
topology: v6e:2x2x1
jax: 0.10.0
libtpu: 0.0.40
codegen_flags: <defaults>
</compile_context>

<pallas_src>
import functools

import jax
import jax.numpy as jnp
import numpy as np
from jax import lax
from jax.experimental import pallas as pl
from jax.experimental.pallas import tpu as pltpu


def _pick_tile(total, desired):
    """Largest divisor of `total` <= desired, preferring multiples of 8 and at most
    total//2 so megacore gets >=2 spatial blocks per batch even at N=1."""
    cap = max(1, min(desired, total // 2 if total >= 16 else total))
    fallback = None
    for t in range(cap, 0, -1):
        if total % t == 0:
            if t % 8 == 0 or t == total:
                return t
            if fallback is None:
                fallback = t
    return fallback if fallback is not None else total


# ---------------------------------------------------------------------------
# Kernel 1: Conv3x3 (im2col matmul, BN scale folded into weights) + shift + ReLU
#           + Dropout(eval = identity) + Conv1x1 + bias        -> z (rows, n_classes)
# ---------------------------------------------------------------------------
def conv_bn_relu_1x1_kernel(p_ref, w3_ref, shift_ref, w1_ref, bias_ref, z_ref):
    # p_ref: (1, row_tile, 9*Cin) bf16;  w3_ref: (9*Cin, Cmid) bf16 (bn scale folded in)
    y = jnp.dot(p_ref[0], w3_ref[...], preferred_element_type=jnp.float32)
    y = jnp.maximum(y + shift_ref[...], 0.0)          # BN shift + ReLU
    # Dropout(0.1): identity in eval mode.
    z = jnp.dot(y.astype(w1_ref.dtype), w1_ref[...],
                preferred_element_type=jnp.float32)
    z_ref[0] = (z + bias_ref[...]).astype(z_ref.dtype)   # bias commutes with upsample


def conv_head(patches, w3s, bn_shift, w1, bias, *, row_tile_hint=512):
    # patches: (N, H*W, 9*Cin) bf16;  w3s: (9*Cin, Cmid) bf16;  w1: (Cmid, C) bf16
    N, HW, K9 = patches.shape
    Cmid = w3s.shape[-1]
    C = w1.shape[-1]
    row_tile = _pick_tile(HW, row_tile_hint)
    flops = 2 * N * HW * (K9 * Cmid + Cmid * C)
    bytes_accessed = (patches.size * 2 + w3s.size * 2 + w1.size * 2
                      + bn_shift.size * 4 + bias.size * 4 + N * HW * C * 2)
    return pl.pallas_call(
        conv_bn_relu_1x1_kernel,
        out_shape=jax.ShapeDtypeStruct((N, HW, C), jnp.bfloat16),
        grid_spec=pltpu.PrefetchScalarGridSpec(
            num_scalar_prefetch=0,
            grid=(N, HW // row_tile),
            in_specs=[
                pl.BlockSpec((1, row_tile, K9), lambda n, r: (n, r, 0)),
                pl.BlockSpec((K9, Cmid), lambda n, r: (0, 0)),
                pl.BlockSpec((1, Cmid), lambda n, r: (0, 0)),
                pl.BlockSpec((Cmid, C), lambda n, r: (0, 0)),
                pl.BlockSpec((1, C), lambda n, r: (0, 0)),
            ],
            out_specs=pl.BlockSpec((1, row_tile, C), lambda n, r: (n, r, 0)),
        ),
        compiler_params=pltpu.CompilerParams(
            dimension_semantics=("parallel", "parallel"),
            vmem_limit_bytes=32 * 1024 * 1024),
        cost_estimate=pl.CostEstimate(flops=flops, transcendentals=0,
                                      bytes_accessed=bytes_accessed),
    )(patches, w3s, bn_shift, w1, bias)


# ---------------------------------------------------------------------------
# Kernel 2: bilinear upsample per class plane:  out[n,c] = A_h_tile @ z[n,c] @ A_w^T
#           Output written directly as NCHW bf16, lane-dense over Wout (multiple of 128).
# ---------------------------------------------------------------------------
def upsample_kernel(z_ref, ah_ref, awt_ref, o_ref):
    # z_ref: (1, C, H, W) bf16 class planes;  ah_ref: (hout_tile, H);  awt_ref: (W, Wout)
    ah = ah_ref[...]
    awt = awt_ref[...]
    n_classes = z_ref.shape[1]
    for c in range(n_classes):          # static unroll: two small 2-D matmuls per class
        t = jnp.dot(ah, z_ref[0, c], preferred_element_type=jnp.float32)
        o_ref[0, c] = jnp.dot(t.astype(awt.dtype), awt,
                              preferred_element_type=jnp.float32).astype(o_ref.dtype)


def bilinear_head(z_planes, A_h, A_wT, *, hout_tile_hint=128):
    # z_planes: (N, C, H, W) bf16;  A_h: (Hout, H) bf16;  A_wT: (W, Wout) bf16
    N, C, H, W = z_planes.shape
    Hout = A_h.shape[0]
    Wout = A_wT.shape[-1]
    hout_tile = _pick_tile(Hout, hout_tile_hint)
    flops = 2 * N * C * (Hout * H * W + Hout * W * Wout)
    bytes_accessed = (z_planes.size * 2 + A_h.size * 2 + A_wT.size * 2
                      + N * C * Hout * Wout * 2)
    return pl.pallas_call(
        upsample_kernel,
        out_shape=jax.ShapeDtypeStruct((N, C, Hout, Wout), jnp.bfloat16),
        grid_spec=pltpu.PrefetchScalarGridSpec(
            num_scalar_prefetch=0,
            grid=(N, Hout // hout_tile),
            in_specs=[
                pl.BlockSpec((1, C, H, W), lambda n, h: (n, 0, 0, 0)),
                pl.BlockSpec((hout_tile, H), lambda n, h: (h, 0)),
                pl.BlockSpec((W, Wout), lambda n, h: (0, 0)),
            ],
            out_specs=pl.BlockSpec((1, C, hout_tile, Wout), lambda n, h: (n, 0, h, 0)),
        ),
        compiler_params=pltpu.CompilerParams(
            dimension_semantics=("parallel", "parallel"),
            vmem_limit_bytes=32 * 1024 * 1024),
        cost_estimate=pl.CostEstimate(flops=flops, transcendentals=0,
                                      bytes_accessed=bytes_accessed),
    )(z_planes, A_h, A_wT)


# ---------------------------------------------------------------------------
# Glue: bilinear matrices, parameter init, full forward
# ---------------------------------------------------------------------------
def bilinear_matrix(out_size, in_size):
    """Row-stochastic matrix reproducing PyTorch bilinear upsample (align_corners=False)."""
    scale = in_size / out_size
    i = np.arange(out_size, dtype=np.float64)
    src = (i + 0.5) * scale - 0.5
    src = np.maximum(src, 0.0)                    # PyTorch clamps negative source idx
    i0 = np.floor(src).astype(np.int64)
    i0 = np.minimum(i0, in_size - 1)
    i1 = np.minimum(i0 + 1, in_size - 1)
    w1 = src - i0
    w0 = 1.0 - w1
    A = np.zeros((out_size, in_size), dtype=np.float64)
    A[np.arange(out_size), i0] += w0
    A[np.arange(out_size), i1] += w1
    return jnp.asarray(A, dtype=jnp.float32)


def init_params(key, in_chan, mid_chan, n_classes):
    k1, k2 = jax.random.split(key)
    # ConvBNReLU conv: kaiming_normal_(mode='fan_out', nonlinearity='relu')
    fan_out = mid_chan * 3 * 3
    w3 = jax.random.normal(k1, (3, 3, in_chan, mid_chan), jnp.float32) * np.sqrt(2.0 / fan_out)
    # BatchNorm2d (eval, default stats): gamma=1, beta=0, mean=0, var=1, eps=1e-5
    gamma = jnp.ones((mid_chan,), jnp.float32)
    beta = jnp.zeros((mid_chan,), jnp.float32)
    rmean = jnp.zeros((mid_chan,), jnp.float32)
    rvar = jnp.ones((mid_chan,), jnp.float32)
    eps = 1e-5
    bn_scale = (gamma / jnp.sqrt(rvar + eps)).reshape(1, mid_chan)
    bn_shift = (beta - rmean * gamma / jnp.sqrt(rvar + eps)).reshape(1, mid_chan)
    # 1x1 conv: kaiming_normal_(a=1) -> gain=1, fan_in mode, std = 1/sqrt(mid_chan)
    w1 = jax.random.normal(k2, (mid_chan, n_classes), jnp.float32) / np.sqrt(mid_chan)
    bias = jnp.zeros((1, n_classes), jnp.float32)
    return w3, bn_scale, bn_shift, w1, bias


@functools.partial(jax.jit, static_argnames=("up_factor",))
def segment_head_forward(x_nchw, params, *, up_factor):
    w3, bn_scale, bn_shift, w1, bias = params
    N, Cin, H, W = x_nchw.shape
    Cmid = w3.shape[-1]
    C = w1.shape[-1]
    Hout, Wout = H * up_factor, W * up_factor

    # Stage-1 prep: im2col in the wrapper (cheap at small Cin); BN scale folded into the
    # conv-weight columns so the kernel body is matmul + add + relu + matmul.
    x_nhwc = jnp.transpose(x_nchw, (0, 2, 3, 1))
    xp = jnp.pad(x_nhwc, ((0, 0), (1, 1), (1, 1), (0, 0)))
    patches = jnp.concatenate(
        [xp[:, ky:ky + H, kx:kx + W, :] for ky in range(3) for kx in range(3)], axis=-1)
    patches = patches.reshape(N, H * W, 9 * Cin).astype(jnp.bfloat16)
    w3s = (w3.reshape(9 * Cin, Cmid) * bn_scale).astype(jnp.bfloat16)   # fold BN scale
    w1b = w1.astype(jnp.bfloat16)

    # Kernel 1: Conv3x3 + BN + ReLU + Dropout(eval=id) + Conv1x1 + bias, fused.
    z = conv_head(patches, w3s, bn_shift, w1b, bias)            # (N, H*W, C) bf16

    # Tiny relayout of the n_classes-wide intermediate to class planes; the big upsampled
    # output is written NCHW directly by kernel 2 (no full-size trailing transpose).
    z_planes = z.reshape(N, H, W, C).transpose(0, 3, 1, 2)      # (N, C, H, W) bf16

    # Bilinear operators (exact in bf16 for power-of-two up factors).
    A_h = bilinear_matrix(Hout, H).astype(jnp.bfloat16)         # (Hout, H)
    A_wT = bilinear_matrix(Wout, W).T.astype(jnp.bfloat16)      # (W, Wout)

    # Kernel 2: out[n, c] = A_h @ z[n, c] @ A_w^T  -> NCHW bf16, lane-dense over Wout.
    return bilinear_head(z_planes, A_h, A_wT)                   # (N, C, Hout, Wout) bf16


# ---------------------------------------------------------------------------
# Pure-JAX reference (PyTorch semantics) for correctness check
# ---------------------------------------------------------------------------
def reference_forward(x_nchw, params, up_factor):
    w3, bn_scale, bn_shift, w1, bias = params
    N, Cin, H, W = x_nchw.shape
    w_oihw = jnp.transpose(w3, (3, 2, 0, 1))
    feat = lax.conv_general_dilated(x_nchw, w_oihw, (1, 1), ((1, 1), (1, 1)),
                                    dimension_numbers=("NCHW", "OIHW", "NCHW"))
    feat = feat * bn_scale[0][None, :, None, None] + bn_shift[0][None, :, None, None]
    feat = jnp.maximum(feat, 0.0)
    z = jnp.einsum("nchw,co->nohw", feat, w1) + bias[0][None, :, None, None]
    A_h = bilinear_matrix(H * up_factor, H)
    A_w = bilinear_matrix(W * up_factor, W)
    return jnp.einsum("ph,qw,nchw->ncpq", A_h, A_w, z)


if __name__ == "__main__":
    # Shapes consistent with the module: in_chan=4, mid_chan=32, n_classes=5,
    # up_factor=8, input x: (N=2, C=4, H=16, W=16)  ->  output (2, 5, 128, 128)
    N, in_chan, H, W = 2, 4, 16, 16
    mid_chan, n_classes, up_factor = 32, 5, 8

    key = jax.random.PRNGKey(0)
    kx, kp = jax.random.split(key)
    x = jax.random.normal(kx, (N, in_chan, H, W), jnp.float32)
    params = init_params(kp, in_chan, mid_chan, n_classes)

    out = segment_head_forward(x, params, up_factor=up_factor)
    out = jax.block_until_ready(out)

    ref = jax.block_until_ready(reference_forward(x, params, up_factor))
    assert out.shape == (N, n_classes, H * up_factor, W * up_factor), out.shape
    # bf16 MXU operands + bf16 output with f32 accumulation -> relaxed tolerance.
    np.testing.assert_allclose(np.asarray(out.astype(jnp.float32)), np.asarray(ref),
                               rtol=2e-2, atol=2e-2)

    print("KERNEL_OK")
</pallas_src>

<mosaic_0001>
module attributes {stable_mosaic.version = 11 : i64} {
  func.func @conv_bn_relu_1x1_kernel(%arg0: i32, %arg1: i32, %arg2: memref<1x128x36xbf16, #tpu.memory_space<vmem>>, %arg3: memref<36x32xbf16, #tpu.memory_space<vmem>>, %arg4: memref<1x32xf32, #tpu.memory_space<vmem>>, %arg5: memref<32x5xbf16, #tpu.memory_space<vmem>>, %arg6: memref<1x5xf32, #tpu.memory_space<vmem>>, %arg7: memref<1x128x5xbf16, #tpu.memory_space<vmem>>) attributes {dimension_semantics = [#tpu.dimension_semantics<parallel>, #tpu.dimension_semantics<parallel>], iteration_bounds = array<i64: 2, 2>, scalar_prefetch = 0 : i64, scratch_operands = 0 : i64, tpu.core_type = #tpu.core_type<tc>, window_params = [{transform_indices = @transform_0, window_bounds = array<i64: 1, 128, 36>}, {pipeline_mode = #tpu.pipeline_mode<synchronous>, transform_indices = @transform_1, window_bounds = array<i64: 36, 32>}, {pipeline_mode = #tpu.pipeline_mode<synchronous>, transform_indices = @transform_2, window_bounds = array<i64: 1, 32>}, {pipeline_mode = #tpu.pipeline_mode<synchronous>, transform_indices = @transform_3, window_bounds = array<i64: 32, 5>}, {pipeline_mode = #tpu.pipeline_mode<synchronous>, transform_indices = @transform_4, window_bounds = array<i64: 1, 5>}, {transform_indices = @transform_5, window_bounds = array<i64: 1, 128, 5>}]} {
    %c0 = arith.constant 0 : index
    %c0_0 = arith.constant 0 : index
    %c0_1 = arith.constant 0 : index
    %0 = vector.load %arg2[%c0, %c0_0, %c0_1] : memref<1x128x36xbf16, #tpu.memory_space<vmem>>, vector<1x128x36xbf16>
    %1 = vector.shape_cast %0 : vector<1x128x36xbf16> to vector<128x36xbf16>
    %c0_2 = arith.constant 0 : index
    %c0_3 = arith.constant 0 : index
    %2 = vector.load %arg3[%c0_2, %c0_3] : memref<36x32xbf16, #tpu.memory_space<vmem>>, vector<36x32xbf16>
    %cst = arith.constant dense<0.000000e+00> : vector<128x32xf32>
    %3 = tpu.matmul %1, %2, %cst {dimension_numbers = #tpu.dot_dimension_numbers<[1], [0], [0], [1], [0, 0, 1, 1], [], []>} : vector<128x36xbf16>, vector<36x32xbf16>, vector<128x32xf32> -> vector<128x32xf32>
    %c0_4 = arith.constant 0 : index
    %c0_5 = arith.constant 0 : index
    %4 = vector.load %arg4[%c0_4, %c0_5] : memref<1x32xf32, #tpu.memory_space<vmem>>, vector<1x32xf32>
    %5 = vector.broadcast %4 : vector<1x32xf32> to vector<128x32xf32>
    %6 = arith.addf %3, %5 : vector<128x32xf32>
    %cst_6 = arith.constant 0.000000e+00 : f32
    %7 = vector.broadcast %cst_6 : f32 to vector<128x32xf32>
    %8 = arith.maximumf %6, %7 : vector<128x32xf32>
    %9 = arith.truncf %8 : vector<128x32xf32> to vector<128x32xbf16>
    %c0_7 = arith.constant 0 : index
    %c0_8 = arith.constant 0 : index
    %10 = vector.load %arg5[%c0_7, %c0_8] : memref<32x5xbf16, #tpu.memory_space<vmem>>, vector<32x5xbf16>
    %cst_9 = arith.constant dense<0.000000e+00> : vector<128x5xf32>
    %11 = tpu.matmul %9, %10, %cst_9 {dimension_numbers = #tpu.dot_dimension_numbers<[1], [0], [0], [1], [0, 0, 1, 1], [], []>} : vector<128x32xbf16>, vector<32x5xbf16>, vector<128x5xf32> -> vector<128x5xf32>
    %c0_10 = arith.constant 0 : index
    %c0_11 = arith.constant 0 : index
    %12 = vector.load %arg6[%c0_10, %c0_11] : memref<1x5xf32, #tpu.memory_space<vmem>>, vector<1x5xf32>
    %13 = vector.broadcast %12 : vector<1x5xf32> to vector<128x5xf32>
    %14 = arith.addf %11, %13 : vector<128x5xf32>
    %15 = arith.truncf %14 : vector<128x5xf32> to vector<128x5xbf16>
    %c0_12 = arith.constant 0 : index
    %c0_13 = arith.constant 0 : index
    %c0_14 = arith.constant 0 : index
    %16 = vector.load %arg7[%c0_12, %c0_13, %c0_14] : memref<1x128x5xbf16, #tpu.memory_space<vmem>>, vector<1x128x5xbf16>
    %17 = vector.shape_cast %16 : vector<1x128x5xbf16> to vector<128x5xbf16>
    %18 = vector.shape_cast %15 : vector<128x5xbf16> to vector<1x128x5xbf16>
    tpu.vector_store %arg7[%c0_12, %c0_13, %c0_14], %18 {strides = array<i32>} : memref<1x128x5xbf16, #tpu.memory_space<vmem>>, vector<1x128x5xbf16>,
    return
  }
  func.func @transform_0(%arg0: i32, %arg1: i32) -> (i32, i32, i32) {
    %c0_i32 = arith.constant 0 : i32
    %c0_i32_0 = arith.constant 0 : i32
    return %arg0, %arg1, %c0_i32 : i32, i32, i32
  }
  func.func @transform_1(%arg0: i32, %arg1: i32) -> (i32, i32) {
    %c0_i32 = arith.constant 0 : i32
    %c0_i32_0 = arith.constant 0 : i32
    %c0_i32_1 = arith.constant 0 : i32
    return %c0_i32, %c0_i32_0 : i32, i32
  }
  func.func @transform_2(%arg0: i32, %arg1: i32) -> (i32, i32) {
    %c0_i32 = arith.constant 0 : i32
    %c0_i32_0 = arith.constant 0 : i32
    %c0_i32_1 = arith.constant 0 : i32
    return %c0_i32, %c0_i32_0 : i32, i32
  }
  func.func @transform_3(%arg0: i32, %arg1: i32) -> (i32, i32) {
    %c0_i32 = arith.constant 0 : i32
    %c0_i32_0 = arith.constant 0 : i32
    %c0_i32_1 = arith.constant 0 : i32
    return %c0_i32, %c0_i32_0 : i32, i32
  }
  func.func @transform_4(%arg0: i32, %arg1: i32) -> (i32, i32) {
    %c0_i32 = arith.constant 0 : i32
    %c0_i32_0 = arith.constant 0 : i32
    %c0_i32_1 = arith.constant 0 : i32
    return %c0_i32, %c0_i32_0 : i32, i32
  }
  func.func @transform_5(%arg0: i32, %arg1: i32) -> (i32, i32, i32) {
    %c0_i32 = arith.constant 0 : i32
    %c0_i32_0 = arith.constant 0 : i32
    return %arg0, %arg1, %c0_i32 : i32, i32, i32
  }
}

module attributes {stable_mosaic.version = 11 : i64} {
  func.func @upsample_kernel(%arg0: i32, %arg1: i32, %arg2: memref<1x5x16x16xbf16, #tpu.memory_space<vmem>>, %arg3: memref<64x16xbf16, #tpu.memory_space<vmem>>, %arg4: memref<16x128xbf16, #tpu.memory_space<vmem>>, %arg5: memref<1x5x64x128xbf16, #tpu.memory_space<vmem>>) attributes {dimension_semantics = [#tpu.dimension_semantics<parallel>, #tpu.dimension_semantics<parallel>], iteration_bounds = array<i64: 2, 2>, scalar_prefetch = 0 : i64, scratch_operands = 0 : i64, tpu.core_type = #tpu.core_type<tc>, window_params = [{transform_indices = @transform_0, window_bounds = array<i64: 1, 5, 16, 16>}, {transform_indices = @transform_1, window_bounds = array<i64: 64, 16>}, {pipeline_mode = #tpu.pipeline_mode<synchronous>, transform_indices = @transform_2, window_bounds = array<i64: 16, 128>}, {transform_indices = @transform_3, window_bounds = array<i64: 1, 5, 64, 128>}]} {
    %c0 = arith.constant 0 : index
    %c0_0 = arith.constant 0 : index
    %0 = vector.load %arg3[%c0, %c0_0] : memref<64x16xbf16, #tpu.memory_space<vmem>>, vector<64x16xbf16>
    %c0_1 = arith.constant 0 : index
    %c0_2 = arith.constant 0 : index
    %1 = vector.load %arg4[%c0_1, %c0_2] : memref<16x128xbf16, #tpu.memory_space<vmem>>, vector<16x128xbf16>
    %c0_3 = arith.constant 0 : index
    %c0_4 = arith.constant 0 : index
    %c0_5 = arith.constant 0 : index
    %c0_6 = arith.constant 0 : index
    %2 = vector.load %arg2[%c0_3, %c0_4, %c0_5, %c0_6] : memref<1x5x16x16xbf16, #tpu.memory_space<vmem>>, vector<1x1x16x16xbf16>
    %3 = vector.shape_cast %2 : vector<1x1x16x16xbf16> to vector<16x16xbf16>
    %cst = arith.constant dense<0.000000e+00> : vector<64x16xf32>
    %4 = tpu.matmul %0, %3, %cst {dimension_numbers = #tpu.dot_dimension_numbers<[1], [0], [0], [1], [0, 0, 1, 1], [], []>} : vector<64x16xbf16>, vector<16x16xbf16>, vector<64x16xf32> -> vector<64x16xf32>
    %5 = arith.truncf %4 : vector<64x16xf32> to vector<64x16xbf16>
    %cst_7 = arith.constant dense<0.000000e+00> : vector<64x128xf32>
    %6 = tpu.matmul %5, %1, %cst_7 {dimension_numbers = #tpu.dot_dimension_numbers<[1], [0], [0], [1], [0, 0, 1, 1], [], []>} : vector<64x16xbf16>, vector<16x128xbf16>, vector<64x128xf32> -> vector<64x128xf32>
    %7 = arith.truncf %6 : vector<64x128xf32> to vector<64x128xbf16>
    %c0_8 = arith.constant 0 : index
    %c0_9 = arith.constant 0 : index
    %c0_10 = arith.constant 0 : index
    %c0_11 = arith.constant 0 : index
    %8 = vector.load %arg5[%c0_8, %c0_9, %c0_10, %c0_11] : memref<1x5x64x128xbf16, #tpu.memory_space<vmem>>, vector<1x1x64x128xbf16>
    %9 = vector.shape_cast %8 : vector<1x1x64x128xbf16> to vector<64x128xbf16>
    %10 = vector.shape_cast %7 : vector<64x128xbf16> to vector<1x1x64x128xbf16>
    tpu.vector_store %arg5[%c0_8, %c0_9, %c0_10, %c0_11], %10 {strides = array<i32>} : memref<1x5x64x128xbf16, #tpu.memory_space<vmem>>, vector<1x1x64x128xbf16>,
    %c0_12 = arith.constant 0 : index
    %c1 = arith.constant 1 : index
    %c0_13 = arith.constant 0 : index
    %c0_14 = arith.constant 0 : index
    %11 = vector.load %arg2[%c0_12, %c1, %c0_13, %c0_14] : memref<1x5x16x16xbf16, #tpu.memory_space<vmem>>, vector<1x1x16x16xbf16>
    %12 = vector.shape_cast %11 : vector<1x1x16x16xbf16> to vector<16x16xbf16>
    %cst_15 = arith.constant dense<0.000000e+00> : vector<64x16xf32>
    %13 = tpu.matmul %0, %12, %cst_15 {dimension_numbers = #tpu.dot_dimension_numbers<[1], [0], [0], [1], [0, 0, 1, 1], [], []>} : vector<64x16xbf16>, vector<16x16xbf16>, vector<64x16xf32> -> vector<64x16xf32>
    %14 = arith.truncf %13 : vector<64x16xf32> to vector<64x16xbf16>
    %cst_16 = arith.constant dense<0.000000e+00> : vector<64x128xf32>
    %15 = tpu.matmul %14, %1, %cst_16 {dimension_numbers = #tpu.dot_dimension_numbers<[1], [0], [0], [1], [0, 0, 1, 1], [], []>} : vector<64x16xbf16>, vector<16x128xbf16>, vector<64x128xf32> -> vector<64x128xf32>
    %16 = arith.truncf %15 : vector<64x128xf32> to vector<64x128xbf16>
    %c0_17 = arith.constant 0 : index
    %c1_18 = arith.constant 1 : index
    %c0_19 = arith.constant 0 : index
    %c0_20 = arith.constant 0 : index
    %17 = vector.load %arg5[%c0_17, %c1_18, %c0_19, %c0_20] : memref<1x5x64x128xbf16, #tpu.memory_space<vmem>>, vector<1x1x64x128xbf16>
    %18 = vector.shape_cast %17 : vector<1x1x64x128xbf16> to vector<64x128xbf16>
    %19 = vector.shape_cast %16 : vector<64x128xbf16> to vector<1x1x64x128xbf16>
    tpu.vector_store %arg5[%c0_17, %c1_18, %c0_19, %c0_20], %19 {strides = array<i32>} : memref<1x5x64x128xbf16, #tpu.memory_space<vmem>>, vector<1x1x64x128xbf16>,
    %c0_21 = arith.constant 0 : index
    %c2 = arith.constant 2 : index
    %c0_22 = arith.constant 0 : index
    %c0_23 = arith.constant 0 : index
    %20 = vector.load %arg2[%c0_21, %c2, %c0_22, %c0_23] : memref<1x5x16x16xbf16, #tpu.memory_space<vmem>>, vector<1x1x16x16xbf16>
    %21 = vector.shape_cast %20 : vector<1x1x16x16xbf16> to vector<16x16xbf16>
    %cst_24 = arith.constant dense<0.000000e+00> : vector<64x16xf32>
    %22 = tpu.matmul %0, %21, %cst_24 {dimension_numbers = #tpu.dot_dimension_numbers<[1], [0], [0], [1], [0, 0, 1, 1], [], []>} : vector<64x16xbf16>, vector<16x16xbf16>, vector<64x16xf32> -> vector<64x16xf32>
    %23 = arith.truncf %22 : vector<64x16xf32> to vector<64x16xbf16>
    %cst_25 = arith.constant dense<0.000000e+00> : vector<64x128xf32>
    %24 = tpu.matmul %23, %1, %cst_25 {dimension_numbers = #tpu.dot_dimension_numbers<[1], [0], [0], [1], [0, 0, 1, 1], [], []>} : vector<64x16xbf16>, vector<16x128xbf16>, vector<64x128xf32> -> vector<64x128xf32>
    %25 = arith.truncf %24 : vector<64x128xf32> to vector<64x128xbf16>
    %c0_26 = arith.constant 0 : index
    %c2_27 = arith.constant 2 : index
    %c0_28 = arith.constant 0 : index
    %c0_29 = arith.constant 0 : index
    %26 = vector.load %arg5[%c0_26, %c2_27, %c0_28, %c0_29] : memref<1x5x64x128xbf16, #tpu.memory_space<vmem>>, vector<1x1x64x128xbf16>
    %27 = vector.shape_cast %26 : vector<1x1x64x128xbf16> to vector<64x128xbf16>
    %28 = vector.shape_cast %25 : vector<64x128xbf16> to vector<1x1x64x128xbf16>
    tpu.vector_store %arg5[%c0_26, %c2_27, %c0_28, %c0_29], %28 {strides = array<i32>} : memref<1x5x64x128xbf16, #tpu.memory_space<vmem>>, vector<1x1x64x128xbf16>,
    %c0_30 = arith.constant 0 : index
    %c3 = arith.constant 3 : index
    %c0_31 = arith.constant 0 : index
    %c0_32 = arith.constant 0 : index
    %29 = vector.load %arg2[%c0_30, %c3, %c0_31, %c0_32] : memref<1x5x16x16xbf16, #tpu.memory_space<vmem>>, vector<1x1x16x16xbf16>
    %30 = vector.shape_cast %29 : vector<1x1x16x16xbf16> to vector<16x16xbf16>
    %cst_33 = arith.constant dense<0.000000e+00> : vector<64x16xf32>
    %31 = tpu.matmul %0, %30, %cst_33 {dimension_numbers = #tpu.dot_dimension_numbers<[1], [0], [0], [1], [0, 0, 1, 1], [], []>} : vector<64x16xbf16>, vector<16x16xbf16>, vector<64x16xf32> -> vector<64x16xf32>
    %32 = arith.truncf %31 : vector<64x16xf32> to vector<64x16xbf16>
    %cst_34 = arith.constant dense<0.000000e+00> : vector<64x128xf32>
    %33 = tpu.matmul %32, %1, %cst_34 {dimension_numbers = #tpu.dot_dimension_numbers<[1], [0], [0], [1], [0, 0, 1, 1], [], []>} : vector<64x16xbf16>, vector<16x128xbf16>, vector<64x128xf32> -> vector<64x128xf32>
    %34 = arith.truncf %33 : vector<64x128xf32> to vector<64x128xbf16>
    %c0_35 = arith.constant 0 : index
    %c3_36 = arith.constant 3 : index
    %c0_37 = arith.constant 0 : index
    %c0_38 = arith.constant 0 : index
    %35 = vector.load %arg5[%c0_35, %c3_36, %c0_37, %c0_38] : memref<1x5x64x128xbf16, #tpu.memory_space<vmem>>, vector<1x1x64x128xbf16>
    %36 = vector.shape_cast %35 : vector<1x1x64x128xbf16> to vector<64x128xbf16>
    %37 = vector.shape_cast %34 : vector<64x128xbf16> to vector<1x1x64x128xbf16>
    tpu.vector_store %arg5[%c0_35, %c3_36, %c0_37, %c0_38], %37 {strides = array<i32>} : memref<1x5x64x128xbf16, #tpu.memory_space<vmem>>, vector<1x1x64x128xbf16>,
    %c0_39 = arith.constant 0 : index
    %c4 = arith.constant 4 : index
    %c0_40 = arith.constant 0 : index
    %c0_41 = arith.constant 0 : index
    %38 = vector.load %arg2[%c0_39, %c4, %c0_40, %c0_41] : memref<1x5x16x16xbf16, #tpu.memory_space<vmem>>, vector<1x1x16x16xbf16>
    %39 = vector.shape_cast %38 : vector<1x1x16x16xbf16> to vector<16x16xbf16>
    %cst_42 = arith.constant dense<0.000000e+00> : vector<64x16xf32>
    %40 = tpu.matmul %0, %39, %cst_42 {dimension_numbers = #tpu.dot_dimension_numbers<[1], [0], [0], [1], [0, 0, 1, 1], [], []>} : vector<64x16xbf16>, vector<16x16xbf16>, vector<64x16xf32> -> vector<64x16xf32>
    %41 = arith.truncf %40 : vector<64x16xf32> to vector<64x16xbf16>
    %cst_43 = arith.constant dense<0.000000e+00> : vector<64x128xf32>
    %42 = tpu.matmul %41, %1, %cst_43 {dimension_numbers = #tpu.dot_dimension_numbers<[1], [0], [0], [1], [0, 0, 1, 1], [], []>} : vector<64x16xbf16>, vector<16x128xbf16>, vector<64x128xf32> -> vector<64x128xf32>
    %43 = arith.truncf %42 : vector<64x128xf32> to vector<64x128xbf16>
    %c0_44 = arith.constant 0 : index
    %c4_45 = arith.constant 4 : index
    %c0_46 = arith.constant 0 : index
    %c0_47 = arith.constant 0 : index
    %44 = vector.load %arg5[%c0_44, %c4_45, %c0_46, %c0_47] : memref<1x5x64x128xbf16, #tpu.memory_space<vmem>>, vector<1x1x64x128xbf16>
    %45 = vector.shape_cast %44 : vector<1x1x64x128xbf16> to vector<64x128xbf16>
    %46 = vector.shape_cast %43 : vector<64x128xbf16> to vector<1x1x64x128xbf16>
    tpu.vector_store %arg5[%c0_44, %c4_45, %c0_46, %c0_47], %46 {strides = array<i32>} : memref<1x5x64x128xbf16, #tpu.memory_space<vmem>>, vector<1x1x64x128xbf16>,
    return
  }
  func.func @transform_0(%arg0: i32, %arg1: i32) -> (i32, i32, i32, i32) {
    %c0_i32 = arith.constant 0 : i32
    %c0_i32_0 = arith.constant 0 : i32
    %c0_i32_1 = arith.constant 0 : i32
    %c0_i32_2 = arith.constant 0 : i32
    return %arg0, %c0_i32, %c0_i32_0, %c0_i32_1 : i32, i32, i32, i32
  }
  func.func @transform_1(%arg0: i32, %arg1: i32) -> (i32, i32) {
    %c0_i32 = arith.constant 0 : i32
    %c0_i32_0 = arith.constant 0 : i32
    return %arg1, %c0_i32 : i32, i32
  }
  func.func @transform_2(%arg0: i32, %arg1: i32) -> (i32, i32) {
    %c0_i32 = arith.constant 0 : i32
    %c0_i32_0 = arith.constant 0 : i32
    %c0_i32_1 = arith.constant 0 : i32
    return %c0_i32, %c0_i32_0 : i32, i32
  }
  func.func @transform_3(%arg0: i32, %arg1: i32) -> (i32, i32, i32, i32) {
    %c0_i32 = arith.constant 0 : i32
    %c0_i32_0 = arith.constant 0 : i32
    %c0_i32_1 = arith.constant 0 : i32
    return %arg0, %c0_i32, %arg1, %c0_i32_0 : i32, i32, i32, i32
  }
}

</mosaic_0001>

<bundles_post_ra>
// kernel: segment_head_forward.2
= control target key start
LH: loop header
LB: loop body
LE: loop exit
PB: predicated region body
PF: predicated region fallthrough
CT: control target
= control target key end

     0   :  { %s1077_s18 = smov 0   ;;  %s1079_s19 = smov 0   ;;  %s1224_s0 = inlined_call_operand.vmem [shape: bf16[2,256,36], index: 0, kind: input, shape index: {}]   ;;  %s1225_s1 = inlined_call_operand.vmem [shape: bf16[36,32], index: 1, kind: input, shape index: {}]   ;;  %s1226_s2 = inlined_call_operand.vmem [shape: f32[1,32], index: 2, kind: input, shape index: {}]   ;;  %s1227_s3 = inlined_call_operand.vmem [shape: bf16[32,5], index: 3, kind: input, shape index: {}]   ;;  %s1228_s4 = inlined_call_operand.vmem [shape: f32[1,5], index: 4, kind: input, shape index: {}]   ;;  %s1229_s5 = inlined_call_operand.vmem [shape: bf16[2,256,5], index: 5, kind: output, shape index: {}]  }
   0x1   :  { %s1081_s20 = smov 0   ;;  %s1083_s21 = smov 0  }
   0x2   :  { %s1085_s22 = smov 0  }
   0x3 LB: > { %s24_s23 = sadd.s32 1, %s1037_s20  ;;  %s27_s24 = sadd.s32 1, %s1041_s21  ;;  %s1045_s22 = sphi %s1085_s22, %s15_s22   ;;  %s1041_s21 = sphi %s1083_s21, %s1233_s21   ;;  %s1037_s20 = sphi %s1081_s20, %s1232_s20   ;;  %s1033_s19 = sphi %s1079_s19, %s1231_s19   ;;  %s1029_s18 = sphi %s1077_s18, %s1230_s18  }
   0x4   : > { %p25_p0 = scmp.ge.s32.totalorder %s24_s23, 2  ;;  %p818_p1 = scmp.ge.s32.totalorder %s1045_s22, 1 }
   0x5   : > { %p208_p2 = scmp.lt.s32.totalorder %s1045_s22, 5 }
   0x6   : > { %s1235_s23 = smov (%p25_p0, %s24_s23), 0  ;;  %s1237_s24 = smov (!%p25_p0, %s27_s24), %s1041_s21 }
   0x7   : > { %p209_p3 = pnand %p818_p1, %p208_p2  ;;  %p29_p4 = scmp.ge.s32.totalorder %s1237_s24, 2 }
   0x8   : > { %s819_s29 = sshll.u32 (!%p209_p3), %s1029_s18, 4  ;;  %p245_p5 = scmp.lt.s32.totalorder (!%p209_p3), %s1033_s19, 1 }
   0x9   : > { %s1239_s24 = smov (%p29_p4, %s1237_s24), 0  ;;  %212 = sbr.rel (%p209_p3) target bundleno = 461 (0x1cd), region = 40 }
   0xa   : > { %p247_p6 = scmp.lt.s32.totalorder (!%p209_p3), %s819_s29, 31 }
   0xe   : > { %v994_v0 = vld [vmem:[%s1225_s1 + $0x10] ss:$0 sps:$4 sm:$0x33]   ;;  %vm373_vm0 = vcmask 1041408   ;;  %v995_v1 = vld [vmem:[%s1225_s1 + $0x8] sm:$0xff]   ;;  %v996_v3 = vld [vmem:[%s1225_s1] sm:$0xff]  }
   0xf   : > { %953 = vmatprep.subr.msk.bf16.mxu0 %vm373_vm0, %v994_v0  ;;  %v375_v2 = vsel %vm373_vm0, %v994_v0, 0  ;;  %s1241_s19 = smov (!%p245_p5, %s1033_s19), 1  ;;  %s1243_s29 = smov (!%p247_p6, %s819_s29), 31  ;;  %vm348_vm1 = vcmask 293888   ;;  %v1005_v12 = vld [vmem:[%s1227_s3 + $0x8] sm:$0xff]   ;;  %v1006_v13 = vld [vmem:[%s1227_s3] sm:$0xff]  }
  0x10   : > { %912 = vmatpush3.bf16.msra.mxu0 %v375_v2  ;;  %s820_s7 = sshll.u32 %s1241_s19, 5  ;;  %933 = vmatprep.subr.bf16.mxu1 %v1005_v12  ;;  %v825_v16 = vld [vmem:[%s1226_s2] ss:$0 sm:$0xff]  ;;  %vm521_vm2 = vcmask 261120   ;;  %vm707_vm3 = vcmask 35840  }
  0x11   : > { %913 = vmatprep.subr.bf16.mxu0 %v995_v1  ;;  %s1116_s8 = sadd.s32 %s820_s7, %s1243_s29  ;;  %934 = vmatpush3.bf16.msra.mxu1 %v1005_v12 }
  0x12   : > { %s821_s9 = sshll.u32 %s1116_s8, 2  ;;  %935 = vmatprep.subr.bf16.mxu1 %v1006_v13 }
  0x13   : > { %s252_s12 = scalar_lea.vmem %s1224_s0, %s821_s9  ;;  %s1160_s28 = scalar_lea.vmem %s1229_s5, %s821_s9 }
  0x14   : > { %914 = vmatpush3.bf16.msra.mxu0 %v995_v1  ;;  %v997_v4 = vld [vmem:[%s252_s12] sm:$0xff]   ;;  %v998_v5 = vld [vmem:[%s252_s12 + $0x8] sm:$0xff]   ;;  %v999_v6 = vld [vmem:[%s252_s12 + $0x10] sm:$0xff]  }
  0x15   : > { %915 = vmatprep.subr.bf16.mxu0 %v996_v3  ;;  %917 = vmatprep.mubr.msk.bf16.mxu0 %vm348_vm1, %v997_v4  ;;  %v1000_v7 = vld [vmem:[%s252_s12 + $0x18] sm:$0xff]   ;;  %v1001_v8 = vld [vmem:[%s252_s12 + $0x20] sm:$0xff]   ;;  %v1002_v9 = vld [vmem:[%s252_s12 + $0x28] sm:$0xff]  }
  0x16   : > { %v1003_v10 = vld [vmem:[%s252_s12 + $0x30] sm:$0xff]   ;;  %v1004_v11 = vld [vmem:[%s252_s12 + $0x38] sm:$0xff]   ;;  %936 = vmatpush3.bf16.msra.mxu1 %v1006_v13 }
  0x18   : > { %916 = vmatpush3.bf16.msra.mxu0 %v996_v3 }
  0x1b   : > { %918 = vmatmul.mubr.msk.bf16.vlgmr.msra.gmra.mxu0 %vm348_vm1, %v998_v5 }
  0x1c   : > { %921 = vmatprep.mubr.msk.bf16.mxu0 %vm348_vm1, %v999_v6 }
  0x23   : > { %922 = vmatmul.mubr.msk.bf16.gmra.mxu0 %vm348_vm1, %v1000_v7  ;;  %v1152_v7 = vld [vmem:[%s1228_s4] ss:$0 sm:$0xff] }
  0x24   : > { %925 = vmatprep.mubr.msk.bf16.mxu0 %vm348_vm1, %v1001_v8 }
  0x2b   : > { %926 = vmatmul.mubr.msk.bf16.gmra.mxu0 %vm348_vm1, %v1002_v9 }
  0x2c   : > { %929 = vmatprep.mubr.msk.bf16.mxu0 %vm348_vm1, %v1003_v10 }
  0x33   : > { %930 = vmatmul.mubr.msk.bf16.gmra.mxu0 %vm348_vm1, %v1004_v11 }
  0xdb   : > { %v919_v14 = vpop.f32.mrf.mxu0 }
  0xdc   : > { %v420_v20 = vadd.f32 %v919_v14, %v825_v16 }
  0xdd   : > { %v411_v15 = vpop.f32.mrf.mxu0 }
  0xde   : > { %v412_v18 = vadd.f32 %v825_v16, %v411_v15  ;;  %v476_v27 = vmax.f32 %v420_v20, 0.0 }
  0xdf   : > { %v920_v17 = vpop.f32.mrf.mxu0 }
  0xe0   : > { %v423_v19 = vadd.f32 %v920_v17, %v825_v16  ;;  %v474_v25 = vmax.f32 %v412_v18, 0.0 }
  0xe1   : > { %v414_v21 = vpop.f32.mrf.mxu0 }
  0xe2   : > { %v415_v22 = vadd.f32 %v825_v16, %v414_v21  ;;  %v477_v23 = vmax.f32 %v423_v19, 0.0 }
  0xe3   : > { %v923_v24 = vpop.f32.mrf.mxu0 }
  0xe4   : > { %v475_v26 = vmax.f32 %v415_v22, 0.0  ;;  %v491_v30 = vpack.c.bf16 %v477_v23, %v476_v27  ;;  %v436_v34 = vadd.f32 %v923_v24, %v825_v16 }
  0xe5   : > { %v427_v28 = vpop.f32.mrf.mxu0 }
  0xe6   : > { %v490_v29 = vpack.c.bf16 %v475_v26, %v474_v25  ;;  %v428_v32 = vadd.f32 %v825_v16, %v427_v28  ;;  %v480_v41 = vmax.f32 %v436_v34, 0.0 }
  0xe7   : > { %v924_v31 = vpop.f32.mrf.mxu0 }
  0xe8   : > { %v439_v33 = vadd.f32 %v924_v31, %v825_v16  ;;  %937 = vmatprep.mubr.msk.bf16.mxu1 %vm521_vm2, %v490_v29  ;;  %v478_v39 = vmax.f32 %v428_v32, 0.0 }
  0xe9   : > { %v430_v35 = vpop.f32.mrf.mxu0  ;;  %938 = vmatmul.mubr.msk.bf16.vlgmr.msra.gmra.mxu1 %vm521_vm2, %v491_v30 }
  0xea   : > { %v431_v36 = vadd.f32 %v825_v16, %v430_v35  ;;  %v481_v37 = vmax.f32 %v439_v33, 0.0 }
  0xeb   : > { %v927_v38 = vpop.f32.mrf.mxu0 }
  0xec   : > { %v479_v40 = vmax.f32 %v431_v36, 0.0  ;;  %v493_v44 = vpack.c.bf16 %v481_v37, %v480_v41  ;;  %v452_v48 = vadd.f32 %v927_v38, %v825_v16 }
  0xed   : > { %v443_v42 = vpop.f32.mrf.mxu0 }
  0xee   : > { %v492_v43 = vpack.c.bf16 %v479_v40, %v478_v39  ;;  %v444_v46 = vadd.f32 %v825_v16, %v443_v42  ;;  %v484_v55 = vmax.f32 %v452_v48, 0.0 }
  0xef   : > { %v928_v45 = vpop.f32.mrf.mxu0 }
  0xf0   : > { %v455_v47 = vadd.f32 %v928_v45, %v825_v16  ;;  %941 = vmatprep.mubr.msk.bf16.mxu1 %vm521_vm2, %v492_v43  ;;  %v482_v53 = vmax.f32 %v444_v46, 0.0 }
  0xf1   : > { %v446_v49 = vpop.f32.mrf.mxu0  ;;  %942 = vmatmul.mubr.msk.bf16.gmra.mxu1 %vm521_vm2, %v493_v44 }
  0xf2   : > { %v447_v50 = vadd.f32 %v825_v16, %v446_v49  ;;  %v485_v51 = vmax.f32 %v455_v47, 0.0 }
  0xf3   : > { %v931_v52 = vpop.f32.mrf.mxu0 }
  0xf4   : > { %v483_v54 = vmax.f32 %v447_v50, 0.0  ;;  %v495_v58 = vpack.c.bf16 %v485_v51, %v484_v55  ;;  %v468_v62 = vadd.f32 %v931_v52, %v825_v16 }
  0xf5   : > { %v459_v56 = vpop.f32.mrf.mxu0 }
  0xf6   : > { %v494_v57 = vpack.c.bf16 %v483_v54, %v482_v53  ;;  %v460_v60 = vadd.f32 %v825_v16, %v459_v56  ;;  %v488_v4 = vmax.f32 %v468_v62, 0.0 }
  0xf7   : > { %v932_v59 = vpop.f32.mrf.mxu0 }
  0xf8   : > { %v471_v61 = vadd.f32 %v932_v59, %v825_v16  ;;  %945 = vmatprep.mubr.msk.bf16.mxu1 %vm521_vm2, %v494_v57  ;;  %v486_v2 = vmax.f32 %v460_v60, 0.0 }
  0xf9   : > { %v462_v63 = vpop.f32.mrf.mxu0  ;;  %946 = vmatmul.mubr.msk.bf16.gmra.mxu1 %vm521_vm2, %v495_v58 }
  0xfa   : > { %v463_v0 = vadd.f32 %v825_v16, %v462_v63  ;;  %v489_v1 = vmax.f32 %v471_v61, 0.0 }
  0xfc   : > { %v487_v3 = vmax.f32 %v463_v0, 0.0  ;;  %v497_v6 = vpack.c.bf16 %v489_v1, %v488_v4 }
  0xfe   : > { %v496_v5 = vpack.c.bf16 %v487_v3, %v486_v2 }
 0x100   : > { %949 = vmatprep.mubr.msk.bf16.mxu1 %vm521_vm2, %v496_v5 }
 0x101   : > { %950 = vmatmul.mubr.msk.bf16.gmra.mxu1 %vm521_vm2, %v497_v6 }
 0x1a9   : > { %v939_v8 = vpop.f32.mrf.mxu1 }
 0x1aa   : > { %v589_v9 = vadd.f32 %v939_v8, %v1152_v7 }
 0x1ab   : > { %v580_v10 = vpop.f32.mrf.mxu1 }
 0x1ac   : > { %v876_v11 = vpack.c.bf16 %v589_v9, %v589_v9  ;;  %v581_v12 = vadd.f32 %v1152_v7, %v580_v10 }
 0x1ad   : > { %v940_v13 = vpop.f32.mrf.mxu1 }
 0x1ae   : > { %710 = vst.msk [vmem:[%s1160_s28 + $0x8] sm:$0xf] %vm707_vm3, %v876_v11  ;;  %v874_v14 = vpack.c.bf16 %v581_v12, %v581_v12  ;;  %v592_v15 = vadd.f32 %v940_v13, %v1152_v7 }
 0x1af   : > { %v583_v16 = vpop.f32.mrf.mxu1 }
 0x1b0   : > { %708 = vst.msk [vmem:[%s1160_s28] sm:$0xf] %vm707_vm3, %v874_v14  ;;  %v877_v17 = vpack.c.bf16 %v592_v15, %v592_v15  ;;  %v584_v18 = vadd.f32 %v1152_v7, %v583_v16 }
 0x1b1   : > { %v943_v19 = vpop.f32.mrf.mxu1 }
 0x1b2   : > { %711 = vst.msk [vmem:[%s1160_s28 + $0xc] sm:$0xf] %vm707_vm3, %v877_v17  ;;  %v875_v20 = vpack.c.bf16 %v584_v18, %v584_v18  ;;  %v605_v21 = vadd.f32 %v943_v19, %v1152_v7 }
 0x1b3   : > { %v596_v22 = vpop.f32.mrf.mxu1 }
 0x1b4   : > { %709 = vst.msk [vmem:[%s1160_s28 + $0x4] sm:$0xf] %vm707_vm3, %v875_v20  ;;  %v880_v23 = vpack.c.bf16 %v605_v21, %v605_v21  ;;  %v597_v24 = vadd.f32 %v1152_v7, %v596_v22 }
 0x1b5   : > { %v944_v25 = vpop.f32.mrf.mxu1 }
 0x1b6   : > { %714 = vst.msk [vmem:[%s1160_s28 + $0x18] sm:$0xf] %vm707_vm3, %v880_v23  ;;  %v878_v26 = vpack.c.bf16 %v597_v24, %v597_v24  ;;  %v608_v27 = vadd.f32 %v944_v25, %v1152_v7 }
 0x1b7   : > { %v599_v28 = vpop.f32.mrf.mxu1 }
 0x1b8   : > { %712 = vst.msk [vmem:[%s1160_s28 + $0x10] sm:$0xf] %vm707_vm3, %v878_v26  ;;  %v881_v29 = vpack.c.bf16 %v608_v27, %v608_v27  ;;  %v600_v30 = vadd.f32 %v1152_v7, %v599_v28 }
 0x1b9   : > { %v947_v31 = vpop.f32.mrf.mxu1 }
 0x1ba   : > { %715 = vst.msk [vmem:[%s1160_s28 + $0x1c] sm:$0xf] %vm707_vm3, %v881_v29  ;;  %v879_v32 = vpack.c.bf16 %v600_v30, %v600_v30  ;;  %v621_v33 = vadd.f32 %v947_v31, %v1152_v7 }
 0x1bb   : > { %v612_v34 = vpop.f32.mrf.mxu1 }
 0x1bc   : > { %713 = vst.msk [vmem:[%s1160_s28 + $0x14] sm:$0xf] %vm707_vm3, %v879_v32  ;;  %v884_v35 = vpack.c.bf16 %v621_v33, %v621_v33  ;;  %v613_v36 = vadd.f32 %v1152_v7, %v612_v34 }
 0x1bd   : > { %v948_v37 = vpop.f32.mrf.mxu1 }
 0x1be   : > { %718 = vst.msk [vmem:[%s1160_s28 + $0x28] sm:$0xf] %vm707_vm3, %v884_v35  ;;  %v882_v38 = vpack.c.bf16 %v613_v36, %v613_v36  ;;  %v624_v39 = vadd.f32 %v948_v37, %v1152_v7 }
 0x1bf   : > { %v615_v40 = vpop.f32.mrf.mxu1 }
 0x1c0   : > { %716 = vst.msk [vmem:[%s1160_s28 + $0x20] sm:$0xf] %vm707_vm3, %v882_v38  ;;  %v885_v41 = vpack.c.bf16 %v624_v39, %v624_v39  ;;  %v616_v42 = vadd.f32 %v1152_v7, %v615_v40 }
 0x1c1   : > { %v951_v43 = vpop.f32.mrf.mxu1 }
 0x1c2   : > { %719 = vst.msk [vmem:[%s1160_s28 + $0x2c] sm:$0xf] %vm707_vm3, %v885_v41  ;;  %v883_v44 = vpack.c.bf16 %v616_v42, %v616_v42  ;;  %v637_v45 = vadd.f32 %v951_v43, %v1152_v7 }
 0x1c3   : > { %v628_v46 = vpop.f32.mrf.mxu1 }
 0x1c4   : > { %717 = vst.msk [vmem:[%s1160_s28 + $0x24] sm:$0xf] %vm707_vm3, %v883_v44  ;;  %v888_v47 = vpack.c.bf16 %v637_v45, %v637_v45  ;;  %v629_v48 = vadd.f32 %v1152_v7, %v628_v46 }
 0x1c5   : > { %v952_v49 = vpop.f32.mrf.mxu1 }
 0x1c6   : > { %722 = vst.msk [vmem:[%s1160_s28 + $0x38] sm:$0xf] %vm707_vm3, %v888_v47  ;;  %v886_v50 = vpack.c.bf16 %v629_v48, %v629_v48  ;;  %v640_v51 = vadd.f32 %v952_v49, %v1152_v7 }
 0x1c7   : > { %v631_v52 = vpop.f32.mrf.mxu1 }
 0x1c8   : > { %720 = vst.msk [vmem:[%s1160_s28 + $0x30] sm:$0xf] %vm707_vm3, %v886_v50  ;;  %v889_v53 = vpack.c.bf16 %v640_v51, %v640_v51  ;;  %v632_v54 = vadd.f32 %v1152_v7, %v631_v52 }
 0x1ca   : > { %723 = vst.msk [vmem:[%s1160_s28 + $0x3c] sm:$0xf] %vm707_vm3, %v889_v53  ;;  %v887_v55 = vpack.c.bf16 %v632_v54, %v632_v54 }
 0x1cc   : > { %721 = vst.msk [vmem:[%s1160_s28 + $0x34] sm:$0xf] %vm707_vm3, %v887_v55 }
 0x1cd PF: > { %s15_s22 = sadd.s32 1, %s1045_s22   ;;  %s1230_s18 = smov %s1037_s20 }
 0x1ce   : > { %p12_p7 = scmp.ge.s32.totalorder %s15_s22, 6   ;;  %s1231_s19 = smov %s1041_s21 }
 0x1cf   : > { %s1232_s20 = smov %s1235_s23  ;;  %s1233_s21 = smov %s1239_s24 }
 0x1d0   :  { %14 = sbr.rel (!%p12_p7) target bundleno = 3 (0x3), region = 70 }

// kernel: segment_head_forward.3
= control target key start
LH: loop header
LB: loop body
LE: loop exit
PB: predicated region body
PF: predicated region fallthrough
CT: control target
= control target key end

     0   :  { %8 = vsyncpa [#allocation3], 0  ;;  %s2218_s0 = inlined_call_operand.vmem [shape: bf16[2,5,16,16], index: 0, kind: input, shape index: {}]   ;;  %s2219_s1 = inlined_call_operand.vmem [shape: bf16[128,16], index: 1, kind: input, shape index: {}]   ;;  %s2220_s2 = inlined_call_operand.vmem [shape: bf16[16,128], index: 2, kind: input, shape index: {}]   ;;  %s2221_s3 = inlined_call_operand.hbm [shape: bf16[2,5,128,128], index: 3, kind: output, shape index: {}]  }
   0x1   :  { %10 = vsyncpa [#allocation3 + $0x1], 0  ;;  %s2004_s12 = smov 0   ;;  %s2006_s13 = smov 0  }
   0x2   :  { %s2008_s14 = smov 0   ;;  %s2010_s15 = smov 0  }
   0x3   :  { %s2012_s16 = smov 0   ;;  %s2014_s17 = smov 0  }
   0x4   :  { %s2016_s18 = smov 0   ;;  %s2018_s19 = smov 0  }
   0x5 LB: > { %s1361_s20 = sadd.s32 4294967295, %s1975_s19   ;;  %s1362_s21 = sadd.s32 4294967294, %s1975_s19   ;;  %s1975_s19 = sphi %s2018_s19, %s16_s19   ;;  %s1971_s18 = sphi %s2016_s18, %s2230_s18   ;;  %s1967_s17 = sphi %s2014_s17, %s2229_s17   ;;  %s1963_s16 = sphi %s2012_s16, %s2228_s16   ;;  %s1959_s15 = sphi %s2010_s15, %s2227_s15   ;;  %s1955_s14 = sphi %s2008_s14, %s2226_s14   ;;  %s1951_s13 = sphi %s2006_s13, %s2225_s13   ;;  %s1947_s12 = sphi %s2004_s12, %s2224_s12  }
   0x6   : > { %s25_s22 = sadd.s32 1, %s1967_s17  ;;  %s28_s23 = sadd.s32 1, %s1971_s18 }
   0x7   : > { %p26_p0 = scmp.ge.s32.totalorder %s25_s22, 2  ;;  %p120_p1 = scmp.ne.s32.totalorder %s1955_s14, %s1951_s13 }
   0x8   : > { %p121_p2 = scmp.eq.s32.totalorder %s1361_s20, 3  ;;  %p126_p5 = scmp.ne.s32.totalorder %s1951_s13, %s1947_s12 }
   0x9   : > { %s2232_s22 = smov (%p26_p0, %s25_s22), 0  ;;  %s2234_s23 = smov (!%p26_p0, %s28_s23), %s1971_s18 }
   0xa   : > { %s106_s24 = ssub.s32 %s1967_s17, %s2232_s22  ;;  %p2055_p3 = por %p121_p2, %p120_p1 }
   0xb   : > { %p30_p4 = scmp.ge.s32.totalorder %s2234_s23, 2  ;;  %p127_p6 = scmp.eq.s32.totalorder %s1362_s21, 3 }
   0xc   : > { %p1365_p7 = scmp.ge.s32.totalorder %s1975_s19, 1  ;;  %p165_p9 = scmp.lt.s32.totalorder %s1975_s19, 5 }
   0xd   : > { %s2236_s23 = smov (%p30_p4, %s2234_s23), 0  ;;  %p2064_p8 = por %p127_p6, %p126_p5 }
   0xe   : > { %s105_s27 = ssub.s32 %s1971_s18, %s2236_s23  ;;  %s110_s28 = sadd.s32 1, %s1955_s14 }
   0xf   : > { %s107_s29 = sor.u32 %s106_s24, %s105_s27  ;;  %p166_p10 = pnand %p1365_p7, %p165_p9 }
  0x10   : > { %p108_p11 = scmp.eq.s32.totalorder %s107_s29, 0  ;;  %p194_p12 = scmp.lt.s32.totalorder (!%p166_p10), %s1963_s16, 1 }
  0x11   : > { %169 = sbr.rel (%p166_p10) target bundleno = 518 (0x206), region = 32  ;;  %s2077_s4 = sshll.u32 (!%p166_p10), %s1959_s15, 3 }
  0x12   : > { %s2073_s30 = scalar_select %p108_p11, %s1955_s14, %s110_s28  }
  0x13   : > { %p200_p13 = scmp.lt.s32.totalorder (!%p166_p10), %s2077_s4, 15  ;;  %s191_s28 = sand.u32 (!%p166_p10), 1, %s1951_s13  }
  0x14   : > { %s1812_s29 = smul.u32 (!%p166_p10), 160, %s191_s28 }
  0x16   : > { %s195_s5 = scalar_select %p194_p12, %s1963_s16, 1  ;;  %vm245_vm0 = vcmask 130048   ;;  %v2110_v9 = vld [vmem:[%s2220_s2] sm:$0xff]  }
  0x17   : > { %s201_s6 = scalar_select %p200_p13, %s2077_s4, 15  ;;  %1722 = vmatprep.subr.bf16.mxu1 %v2110_v9 }
  0x18   : > { %s1813_s7 = smul.u32 40, %s195_s5  ;;  %1723 = vmatpush3.bf16.msra.mxu1 %v2110_v9  ;;  %s2146_s5 = scalar_lea.vmem [#allocation2], %s1812_s29 }
  0x19   : > { %s1368_s8 = sshll.u32 %s201_s6, 2  ;;  %1742 = vmatprep.subr.bf16.mxu1 %v2110_v9  ;;  %s1235_s6 = scalar_lea.sflag [#allocation3], %s191_s28 }
  0x1a   : > { %s198_s11 = scalar_lea.vmem %s2218_s0, %s1813_s7  ;;  %s203_s24 = scalar_lea.vmem %s2219_s1, %s1368_s8 }
  0x1b   : > { %v1899_v0 = vld [vmem:[%s198_s11] sm:$0xff]   ;;  %v1901_v2 = vld [vmem:[%s203_s24 + $0x8] sm:$0xff]   ;;  %v1903_v4 = vld [vmem:[%s203_s24 + $0x10] sm:$0xff]  }
  0x1c   : > { %v1900_v1 = vld [vmem:[%s203_s24] sm:$0xff]   ;;  %1712 = vmatprep.subr.bf16.mxu0 %v1899_v0  ;;  %v1902_v3 = vld [vmem:[%s198_s11 + $0x8] sm:$0xff]   ;;  %v1905_v5 = vld [vmem:[%s198_s11 + $0x10] sm:$0xff]  }
  0x1d   : > { %1713 = vmatpush3.bf16.msra.mxu0 %v1899_v0  ;;  %1714 = vmatprep.mubr.msk.bf16.mxu0 %vm245_vm0, %v1900_v1  ;;  %v1904_v6 = vld [vmem:[%s203_s24 + $0x18] sm:$0xff]   ;;  %v1907_v8 = vld [vmem:[%s198_s11 + $0x20] sm:$0xff]  }
  0x1e   : > { %1732 = vmatprep.subr.bf16.mxu0 %v1902_v3  ;;  %v1906_v7 = vld [vmem:[%s198_s11 + $0x18] sm:$0xff]  }
  0x20   : > { %1715 = vmatmul.mubr.msk.bf16.vlgmr.msra.gmra.mxu0 %vm245_vm0, %v1901_v2 }
  0x21   : > { %1733 = vmatpush3.bf16.msra.mxu0 %v1902_v3  ;;  %1718 = vmatprep.mubr.msk.bf16.mxu0 %vm245_vm0, %v1903_v4 }
  0x22   : > { %1752 = vmatprep.subr.bf16.mxu0 %v1905_v5 }
  0x28   : > { %1719 = vmatmul.mubr.msk.bf16.gmra.mxu0 %vm245_vm0, %v1904_v6 }
  0x29   : > { %1734 = vmatprep.mubr.msk.bf16.mxu0 %vm245_vm0, %v1900_v1 }
  0x30   : > { %1735 = vmatmul.mubr.msk.bf16.vlgmr.msra.gmra.mxu0 %vm245_vm0, %v1901_v2 }
  0x31   : > { %1753 = vmatpush3.bf16.msra.mxu0 %v1905_v5  ;;  %1738 = vmatprep.mubr.msk.bf16.mxu0 %vm245_vm0, %v1903_v4 }
  0x32   : > { %1772 = vmatprep.subr.bf16.mxu0 %v1906_v7 }
  0x38   : > { %1739 = vmatmul.mubr.msk.bf16.gmra.mxu0 %vm245_vm0, %v1904_v6 }
  0x39   : > { %1754 = vmatprep.mubr.msk.bf16.mxu0 %vm245_vm0, %v1900_v1 }
  0x40   : > { %1755 = vmatmul.mubr.msk.bf16.vlgmr.msra.gmra.mxu0 %vm245_vm0, %v1901_v2 }
  0x41   : > { %1773 = vmatpush3.bf16.msra.mxu0 %v1906_v7  ;;  %1758 = vmatprep.mubr.msk.bf16.mxu0 %vm245_vm0, %v1903_v4 }
  0x42   : > { %1792 = vmatprep.subr.bf16.mxu0 %v1907_v8 }
  0x48   : > { %1759 = vmatmul.mubr.msk.bf16.gmra.mxu0 %vm245_vm0, %v1904_v6 }
  0x49   : > { %1774 = vmatprep.mubr.msk.bf16.mxu0 %vm245_vm0, %v1900_v1 }
  0x50   : > { %1775 = vmatmul.mubr.msk.bf16.vlgmr.msra.gmra.mxu0 %vm245_vm0, %v1901_v2 }
  0x51   : > { %1793 = vmatpush3.bf16.msra.mxu0 %v1907_v8  ;;  %1778 = vmatprep.mubr.msk.bf16.mxu0 %vm245_vm0, %v1903_v4 }
  0x58   : > { %1779 = vmatmul.mubr.msk.bf16.gmra.mxu0 %vm245_vm0, %v1904_v6 }
  0x59   : > { %1794 = vmatprep.mubr.msk.bf16.mxu0 %vm245_vm0, %v1900_v1 }
  0x60   : > { %1795 = vmatmul.mubr.msk.bf16.vlgmr.msra.gmra.mxu0 %vm245_vm0, %v1901_v2 }
  0x61   : > { %1798 = vmatprep.mubr.msk.bf16.mxu0 %vm245_vm0, %v1903_v4 }
  0x68   : > { %1799 = vmatmul.mubr.msk.bf16.gmra.mxu0 %vm245_vm0, %v1904_v6 }
  0xe0   : > { %v1716_v10 = vpop.f32.mrf.mxu0 }
  0xe2   : > { %v292_v11 = vpop.f32.mrf.mxu0 }
  0xe4   : > { %v1717_v12 = vpop.f32.mrf.mxu0 }
  0xe5   : > { %v324_v15 = vpack.c.bf16 %v1717_v12, %v1716_v10 }
  0xe6   : > { %v295_v13 = vpop.f32.mrf.mxu0 }
  0xe7   : > { %v323_v14 = vpack.c.bf16 %v295_v13, %v292_v11 }
  0xe8   : > { %v1720_v16 = vpop.f32.mrf.mxu0 }
  0xe9   : > { %1724 = vmatprep.mubr.msk.bf16.mxu1 %vm245_vm0, %v323_v14 }
  0xea   : > { %v308_v17 = vpop.f32.mrf.mxu0  ;;  %1725 = vmatmul.mubr.msk.bf16.vlgmr.msra.gmra.mxu1 %vm245_vm0, %v324_v15 }
  0xeb   : > { %1743 = vmatpush3.bf16.msra.mxu1 %v2110_v9 }
  0xec   : > { %v1721_v18 = vpop.f32.mrf.mxu0  ;;  %1762 = vmatprep.subr.bf16.mxu1 %v2110_v9 }
  0xed   : > { %v326_v21 = vpack.c.bf16 %v1721_v18, %v1720_v16 }
  0xee   : > { %v311_v19 = vpop.f32.mrf.mxu0 }
  0xef   : > { %v325_v20 = vpack.c.bf16 %v311_v19, %v308_v17 }
  0xf0   : > { %v1736_v22 = vpop.f32.mrf.mxu0 }
  0xf1   : > { %1728 = vmatprep.mubr.msk.bf16.mxu1 %vm245_vm0, %v325_v20 }
  0xf2   : > { %1729 = vmatmul.mubr.msk.bf16.gmra.mxu1 %vm245_vm0, %v326_v21  ;;  %v493_v23 = vpop.f32.mrf.mxu0 }
  0xf4   : > { %v1737_v24 = vpop.f32.mrf.mxu0 }
  0xf5   : > { %v525_v27 = vpack.c.bf16 %v1737_v24, %v1736_v22 }
  0xf6   : > { %v496_v25 = vpop.f32.mrf.mxu0 }
  0xf7   : > { %v524_v26 = vpack.c.bf16 %v496_v25, %v493_v23 }
  0xf8   : > { %v1740_v28 = vpop.f32.mrf.mxu0 }
  0xf9   : > { %1744 = vmatprep.mubr.msk.bf16.mxu1 %vm245_vm0, %v524_v26 }
  0xfa   : > { %v509_v29 = vpop.f32.mrf.mxu0  ;;  %1745 = vmatmul.mubr.msk.bf16.vlgmr.msra.gmra.mxu1 %vm245_vm0, %v525_v27 }
  0xfb   : > { %1763 = vmatpush3.bf16.msra.mxu1 %v2110_v9 }
  0xfc   : > { %v1741_v30 = vpop.f32.mrf.mxu0  ;;  %1782 = vmatprep.subr.bf16.mxu1 %v2110_v9 }
  0xfd   : > { %v527_v33 = vpack.c.bf16 %v1741_v30, %v1740_v28 }
  0xfe   : > { %v512_v31 = vpop.f32.mrf.mxu0 }
  0xff   : > { %v526_v32 = vpack.c.bf16 %v512_v31, %v509_v29 }
 0x100   : > { %v1756_v34 = vpop.f32.mrf.mxu0 }
 0x101   : > { %1748 = vmatprep.mubr.msk.bf16.mxu1 %vm245_vm0, %v526_v32 }
 0x102   : > { %1749 = vmatmul.mubr.msk.bf16.gmra.mxu1 %vm245_vm0, %v527_v33  ;;  %v689_v35 = vpop.f32.mrf.mxu0 }
 0x104   : > { %v1757_v36 = vpop.f32.mrf.mxu0 }
 0x105   : > { %v721_v39 = vpack.c.bf16 %v1757_v36, %v1756_v34 }
 0x106   : > { %v692_v37 = vpop.f32.mrf.mxu0 }
 0x107   : > { %v720_v38 = vpack.c.bf16 %v692_v37, %v689_v35 }
 0x108   : > { %v1760_v40 = vpop.f32.mrf.mxu0 }
 0x109   : > { %1764 = vmatprep.mubr.msk.bf16.mxu1 %vm245_vm0, %v720_v38 }
 0x10a   : > { %v705_v41 = vpop.f32.mrf.mxu0  ;;  %1765 = vmatmul.mubr.msk.bf16.vlgmr.msra.gmra.mxu1 %vm245_vm0, %v721_v39 }
 0x10b   : > { %1783 = vmatpush3.bf16.msra.mxu1 %v2110_v9 }
 0x10c   : > { %v1761_v42 = vpop.f32.mrf.mxu0  ;;  %1802 = vmatprep.subr.bf16.mxu1 %v2110_v9 }
 0x10d   : > { %v723_v45 = vpack.c.bf16 %v1761_v42, %v1760_v40 }
 0x10e   : > { %v708_v43 = vpop.f32.mrf.mxu0 }
 0x10f   : > { %v722_v44 = vpack.c.bf16 %v708_v43, %v705_v41 }
 0x110   : > { %v1776_v46 = vpop.f32.mrf.mxu0 }
 0x111   : > { %1768 = vmatprep.mubr.msk.bf16.mxu1 %vm245_vm0, %v722_v44 }
 0x112   : > { %1769 = vmatmul.mubr.msk.bf16.gmra.mxu1 %vm245_vm0, %v723_v45  ;;  %v885_v47 = vpop.f32.mrf.mxu0 }
 0x114   : > { %v1777_v48 = vpop.f32.mrf.mxu0 }
 0x115   : > { %v917_v51 = vpack.c.bf16 %v1777_v48, %v1776_v46 }
 0x116   : > { %v888_v49 = vpop.f32.mrf.mxu0 }
 0x117   : > { %v916_v50 = vpack.c.bf16 %v888_v49, %v885_v47 }
 0x118   : > { %v1780_v52 = vpop.f32.mrf.mxu0 }
 0x119   : > { %1784 = vmatprep.mubr.msk.bf16.mxu1 %vm245_vm0, %v916_v50 }
 0x11a   : > { %v901_v53 = vpop.f32.mrf.mxu0  ;;  %1785 = vmatmul.mubr.msk.bf16.vlgmr.msra.gmra.mxu1 %vm245_vm0, %v917_v51 }
 0x11b   : > { %1803 = vmatpush3.bf16.msra.mxu1 %v2110_v9 }
 0x11c   : > { %v1781_v54 = vpop.f32.mrf.mxu0 }
 0x11d   : > { %v919_v57 = vpack.c.bf16 %v1781_v54, %v1780_v52 }
 0x11e   : > { %v904_v55 = vpop.f32.mrf.mxu0 }
 0x11f   : > { %v918_v56 = vpack.c.bf16 %v904_v55, %v901_v53 }
 0x120   : > { %v1796_v58 = vpop.f32.mrf.mxu0 }
 0x121   : > { %1788 = vmatprep.mubr.msk.bf16.mxu1 %vm245_vm0, %v918_v56 }
 0x122   : > { %1789 = vmatmul.mubr.msk.bf16.gmra.mxu1 %vm245_vm0, %v919_v57  ;;  %v1081_v59 = vpop.f32.mrf.mxu0 }
 0x124   : > { %v1797_v60 = vpop.f32.mrf.mxu0 }
 0x125   : > { %v1113_v63 = vpack.c.bf16 %v1797_v60, %v1796_v58 }
 0x126   : > { %v1084_v61 = vpop.f32.mrf.mxu0 }
 0x127   : > { %v1112_v62 = vpack.c.bf16 %v1084_v61, %v1081_v59 }
 0x128   : > { %v1800_v0 = vpop.f32.mrf.mxu0 }
 0x129   : > { %1804 = vmatprep.mubr.msk.bf16.mxu1 %vm245_vm0, %v1112_v62 }
 0x12a   : > { %v1097_v1 = vpop.f32.mrf.mxu0  ;;  %1805 = vmatmul.mubr.msk.bf16.vlgmr.msra.gmra.mxu1 %vm245_vm0, %v1113_v63 }
 0x12c   : > { %v1801_v2 = vpop.f32.mrf.mxu0 }
 0x12d   : > { %v1115_v5 = vpack.c.bf16 %v1801_v2, %v1800_v0 }
 0x12e   : > { %v1100_v3 = vpop.f32.mrf.mxu0 }
 0x12f   : > { %v1114_v4 = vpack.c.bf16 %v1100_v3, %v1097_v1 }
 0x131   : > { %1808 = vmatprep.mubr.msk.bf16.mxu1 %vm245_vm0, %v1114_v4 }
 0x132   : > { %1809 = vmatmul.mubr.msk.bf16.gmra.mxu1 %vm245_vm0, %v1115_v5 }
 0x1aa   : > { %v1726_v6 = vpop.f32.mrf.mxu1 }
 0x1ac   : > { %v379_v7 = vpop.f32.mrf.mxu1 }
 0x1ae   : > { %v1727_v8 = vpop.f32.mrf.mxu1 }
 0x1af   : > { %v1551_v9 = vpack.c.bf16 %v1727_v8, %v1726_v6 }
 0x1b0   : > { %v382_v10 = vpop.f32.mrf.mxu1 }
 0x1b1   : > { %1643 = vst [vmem:[%s2146_s5 + $0x8] sm:$0xff] %v1551_v9   ;;  %v1546_v11 = vpack.c.bf16 %v382_v10, %v379_v7 }
 0x1b2   : > { %v1730_v12 = vpop.f32.mrf.mxu1 }
 0x1b3   : > { %1547 = vst [vmem:[%s2146_s5] sm:$0xff] %v1546_v11  }
 0x1b4   : > { %v395_v13 = vpop.f32.mrf.mxu1 }
 0x1b6   : > { %v1731_v14 = vpop.f32.mrf.mxu1 }
 0x1b7   : > { %v1561_v15 = vpack.c.bf16 %v1731_v14, %v1730_v12 }
 0x1b8   : > { %v398_v16 = vpop.f32.mrf.mxu1 }
 0x1b9   : > { %1645 = vst [vmem:[%s2146_s5 + $0x18] sm:$0xff] %v1561_v15   ;;  %v1556_v17 = vpack.c.bf16 %v398_v16, %v395_v13 }
 0x1ba   : > { %v1746_v18 = vpop.f32.mrf.mxu1 }
 0x1bb   : > { %1644 = vst [vmem:[%s2146_s5 + $0x10] sm:$0xff] %v1556_v17  }
 0x1bc   : > { %v574_v19 = vpop.f32.mrf.mxu1 }
 0x1be   : > { %v1747_v20 = vpop.f32.mrf.mxu1 }
 0x1bf   : > { %v1571_v21 = vpack.c.bf16 %v1747_v20, %v1746_v18 }
 0x1c0   : > { %v577_v22 = vpop.f32.mrf.mxu1 }
 0x1c1   : > { %1647 = vst [vmem:[%s2146_s5 + $0x28] sm:$0xff] %v1571_v21   ;;  %v1566_v23 = vpack.c.bf16 %v577_v22, %v574_v19 }
 0x1c2   : > { %v1750_v24 = vpop.f32.mrf.mxu1 }
 0x1c3   : > { %1646 = vst [vmem:[%s2146_s5 + $0x20] sm:$0xff] %v1566_v23  }
 0x1c4   : > { %v590_v25 = vpop.f32.mrf.mxu1 }
 0x1c6   : > { %v1751_v26 = vpop.f32.mrf.mxu1 }
 0x1c7   : > { %v1581_v27 = vpack.c.bf16 %v1751_v26, %v1750_v24 }
 0x1c8   : > { %v593_v28 = vpop.f32.mrf.mxu1 }
 0x1c9   : > { %1649 = vst [vmem:[%s2146_s5 + $0x38] sm:$0xff] %v1581_v27   ;;  %v1576_v29 = vpack.c.bf16 %v593_v28, %v590_v25 }
 0x1ca   : > { %v1766_v30 = vpop.f32.mrf.mxu1 }
 0x1cb   : > { %1648 = vst [vmem:[%s2146_s5 + $0x30] sm:$0xff] %v1576_v29  }
 0x1cc   : > { %v770_v31 = vpop.f32.mrf.mxu1 }
 0x1ce   : > { %v1767_v32 = vpop.f32.mrf.mxu1 }
 0x1cf   : > { %v1591_v33 = vpack.c.bf16 %v1767_v32, %v1766_v30 }
 0x1d0   : > { %v773_v34 = vpop.f32.mrf.mxu1 }
 0x1d1   : > { %1651 = vst [vmem:[%s2146_s5 + $0x48] sm:$0xff] %v1591_v33   ;;  %v1586_v35 = vpack.c.bf16 %v773_v34, %v770_v31 }
 0x1d2   : > { %v1770_v36 = vpop.f32.mrf.mxu1 }
 0x1d3   : > { %1650 = vst [vmem:[%s2146_s5 + $0x40] sm:$0xff] %v1586_v35  }
 0x1d4   : > { %v786_v37 = vpop.f32.mrf.mxu1 }
 0x1d6   : > { %v1771_v38 = vpop.f32.mrf.mxu1 }
 0x1d7   : > { %v1601_v39 = vpack.c.bf16 %v1771_v38, %v1770_v36 }
 0x1d8   : > { %v789_v40 = vpop.f32.mrf.mxu1 }
 0x1d9   : > { %1653 = vst [vmem:[%s2146_s5 + $0x58] sm:$0xff] %v1601_v39   ;;  %v1596_v41 = vpack.c.bf16 %v789_v40, %v786_v37 }
 0x1da   : > { %v1786_v42 = vpop.f32.mrf.mxu1 }
 0x1db   : > { %1652 = vst [vmem:[%s2146_s5 + $0x50] sm:$0xff] %v1596_v41  }
 0x1dc   : > { %v966_v43 = vpop.f32.mrf.mxu1 }
 0x1de   : > { %v1787_v44 = vpop.f32.mrf.mxu1 }
 0x1df   : > { %v1611_v45 = vpack.c.bf16 %v1787_v44, %v1786_v42 }
 0x1e0   : > { %v969_v46 = vpop.f32.mrf.mxu1 }
 0x1e1   : > { %1655 = vst [vmem:[%s2146_s5 + $0x68] sm:$0xff] %v1611_v45   ;;  %v1606_v47 = vpack.c.bf16 %v969_v46, %v966_v43 }
 0x1e2   : > { %v1790_v48 = vpop.f32.mrf.mxu1 }
 0x1e3   : > { %1654 = vst [vmem:[%s2146_s5 + $0x60] sm:$0xff] %v1606_v47  }
 0x1e4   : > { %v982_v49 = vpop.f32.mrf.mxu1 }
 0x1e6   : > { %v1791_v50 = vpop.f32.mrf.mxu1 }
 0x1e7   : > { %v1621_v51 = vpack.c.bf16 %v1791_v50, %v1790_v48 }
 0x1e8   : > { %v985_v52 = vpop.f32.mrf.mxu1 }
 0x1e9   : > { %1657 = vst [vmem:[%s2146_s5 + $0x78] sm:$0xff] %v1621_v51   ;;  %v1616_v53 = vpack.c.bf16 %v985_v52, %v982_v49 }
 0x1ea   : > { %v1806_v54 = vpop.f32.mrf.mxu1 }
 0x1eb   : > { %1656 = vst [vmem:[%s2146_s5 + $0x70] sm:$0xff] %v1616_v53  }
 0x1ec   : > { %v1162_v55 = vpop.f32.mrf.mxu1 }
 0x1ee   : > { %v1807_v56 = vpop.f32.mrf.mxu1 }
 0x1ef   : > { %v1631_v57 = vpack.c.bf16 %v1807_v56, %v1806_v54 }
 0x1f0   : > { %v1165_v58 = vpop.f32.mrf.mxu1 }
 0x1f1   : > { %1659 = vst [vmem:[%s2146_s5 + $0x88] sm:$0xff] %v1631_v57   ;;  %v1626_v59 = vpack.c.bf16 %v1165_v58, %v1162_v55 }
 0x1f2   : > { %v1810_v60 = vpop.f32.mrf.mxu1 }
 0x1f3   : > { %1658 = vst [vmem:[%s2146_s5 + $0x80] sm:$0xff] %v1626_v59  }
 0x1f4   : > { %v1178_v61 = vpop.f32.mrf.mxu1 }
 0x1f6   : > { %v1811_v62 = vpop.f32.mrf.mxu1 }
 0x1f7   : > { %v1641_v63 = vpack.c.bf16 %v1811_v62, %v1810_v60 }
 0x1f8   : > { %v1181_v0 = vpop.f32.mrf.mxu1 }
 0x1f9   : > { %1661 = vst [vmem:[%s2146_s5 + $0x98] sm:$0xff] %v1641_v63   ;;  %v1636_v1 = vpack.c.bf16 %v1181_v0, %v1178_v61 }
 0x1fb   : > { %1660 = vst [vmem:[%s2146_s5 + $0x90] sm:$0xff] %v1636_v1  }
 0x1fc   : > { %s1814_s7 = smul.u32 80, %s1963_s16  ;;  %s1260_s8 = sshll.u32 %s2146_s5, 4  ;;  %s1261_s8 = int_to_ptr.vmem [resolvable:$true] %s1260_s8 }
 0x1fd   : > { %s1977_s10 = smov 512   ;;  %s1978_s15 = smov 1024  }
 0x1fe   : > { %s1247_s9 = sadd.s32 %s1814_s7, %s2077_s4  ;;  %1815 = sst [smem:[#allocation5]] (%p2055_p3), %s1977_s10 }
 0x1ff   : > { %s1500_s11 = sshll.u32 %s1247_s9, 6  ;;  %1816 = sst [smem:[#allocation5 + $0x1]] (%p2055_p3), %s1978_s15 }
 0x200   : > { %s1249_s24 = scalar_lea.hbm %s2221_s3, %s1500_s11  ;;  %s1979_s27 = smov 8  }
 0x201   : > { %1817 = sst [smem:[#allocation5 + $0x2]] (%p2055_p3), %s1979_s27  ;;  %s1980_s16 = smov 64  }
 0x202   : > { %1818 = sst [smem:[#allocation5 + $0x3]] (%p2055_p3), %s1980_s16  ;;  %s1981_s4 = smov 4  }
 0x203   : > { %1819 = sst [smem:[#allocation5 + $0x4]] (%p2055_p3), %s1980_s16  ;;  %s1982_s28 = smov 131072  }
 0x204   : > { %1820 = sst [smem:[#allocation5 + $0x5]] (%p2055_p3), %s1981_s4  ;;  %s1983_s29 = smov 0  }
 0x205   : > { %1821 = dma.general (%p2055_p3), %s1261_s8, 2560, %s1249_s24, %s1235_s6, %s1982_s28, [#allocation5], %s1983_s29, 0  }
 0x206 PF: > { %p1827_p0 = scmp.ge.s32.totalorder %s1975_s19, 2  ;;  %s1288_s5 = sand.u32 1, %s1947_s12  }
 0x207   : > { %s1289_s7 = scalar_lea.sflag [#allocation3], %s1288_s5 }
 0x208   : > { %p1824_p1 = pnand %p1827_p0, %p2064_p8 }
 0x20a   : > { %p1825_p2 = pneg %p1824_p1 }
 0x20c   : > { %1942 = dma.done.wait (%p1825_p2), %s1289_s7, 2560  }
 0x20d   : > { %1944 = vsyncadd (%p1825_p2), %s1289_s7, 4294964736  ;;  %s16_s19 = sadd.s32 1, %s1975_s19   ;;  %s2224_s12 = smov %s1951_s13 }
 0x20e   : > { %p13_p4 = scmp.ge.s32.totalorder %s16_s19, 6   ;;  %s2225_s13 = smov %s1955_s14 }
 0x20f   : > { %s2226_s14 = smov %s2073_s30  ;;  %s2227_s15 = smov %s1967_s17 }
 0x210   : > { %s2228_s16 = smov %s1971_s18  ;;  %s2229_s17 = smov %s2232_s22 }
 0x211   : > { %s2230_s18 = smov %s2236_s23  ;;  %15 = sbr.rel (!%p13_p4) target bundleno = 5 (0x5), region = 83 }
 0x216   :  { %1294 = vsyncpa [#allocation3], 1 }
 0x217   :  { %1296 = vsyncpa [#allocation3 + $0x1], 1 }

</bundles_post_ra>
